<compile_context>
chip_gen: v7x
topology: tpu7x:2x2x1
jax: 0.10.0
libtpu: 0.0.40
codegen_flags: <defaults>
</compile_context>

<pallas_src>
import functools
from itertools import accumulate

import jax
import jax.numpy as jnp
from jax.experimental import pallas as pl
from jax.experimental.pallas import tpu as pltpu


def hypernet_kernel(h_ref, emb_ref, w_rnn_ref, w_emb_ref, b_ref, w1_ref, out_ref):
    hidden = w_rnn_ref.shape[-1]
    out_size = out_ref.shape[-1]
    # hidden = first_bias + h @ W_rnn^T + emb @ W_emb^T   (f32 MXU accumulation,
    # same summation order as the PyTorch module)
    hid = (
        b_ref[0:1, :hidden]
        + jnp.dot(h_ref[...], w_rnn_ref[...], preferred_element_type=jnp.float32)
        + jnp.dot(emb_ref[...], w_emb_ref[...], preferred_element_type=jnp.float32)
    )
    # hidden = linear_layers[0](tanh(hidden))   (tanh in f32 on the EUP)
    hid = jnp.tanh(hid)
    out = (
        jnp.dot(hid.astype(w1_ref.dtype), w1_ref[...],
                preferred_element_type=jnp.float32)
        + b_ref[1:2, :out_size]
    )
    out_ref[...] = out.astype(out_ref.dtype)


def prepare_hypernet_params(params, weight_dtype=jnp.bfloat16):
    """One-time (load-time) layout prep — transposes/casts out of the hot path.

    params = (w_rnn (H,hist), w_emb (H,emb), first_bias (H,), w1 (O,H), b1 (O,))
    returns (w_rnn^T (hist,H), w_emb^T (emb,H), bias (2,max(H,O)) f32, w1^T (H,O))
    bias row 0 = first_bias (zero-padded), row 1 = b1 (zero-padded).
    """
    w_rnn, w_emb, first_bias, w1, b1 = params
    hidden = first_bias.shape[0]
    out_size = b1.shape[0]
    bwidth = max(hidden, out_size)
    bias = jnp.zeros((2, bwidth), jnp.float32)
    bias = bias.at[0, :hidden].set(first_bias.astype(jnp.float32))
    bias = bias.at[1, :out_size].set(b1.astype(jnp.float32))
    return (
        w_rnn.T.astype(weight_dtype),   # (hist, H)
        w_emb.T.astype(weight_dtype),   # (emb,  H)
        bias,                           # (2, max(H, O)) f32 — stays f32 for VPU add
        w1.T.astype(weight_dtype),      # (H, O)
    )


def _pick_batch_tile(B):
    """Batch tile choice (TC-aware, VMEM-safe).

    * B <= 1024: one tile, one grid step — the grid is a serial loop on v5e/v6e,
      and at this size a second tile is pure per-step overhead; on v7x the
      cross-core sharding cost exceeds the ~50 ns of data movement.
    * B > 1024: biggest tile (<=1024 rows, < 2 MiB double-buffered -> fits every
      generation's VMEM with default limits) dividing B, preferring an even grid
      length so both v7x TensorCores get equal work.
    """
    if B <= 1024:
        return B
    for tb in (1024, 512, 256, 128, 64, 32, 16, 8):
        if B % tb == 0 and (B // tb) % 2 == 0:
            return tb
    for tb in (1024, 512, 256, 128, 64, 32, 16, 8):
        if B % tb == 0:
            return tb
    # Awkward B: cap the tile instead of one giant block (tb=B at huge B would
    # blow v7x's 32 MiB scoped / 64 MiB physical VMEM); last block is ragged.
    return 512


@functools.partial(jax.jit, static_argnames=("param_sizes",))
def hypernet_forward(h, emb, prepped_params, param_sizes):
    """Hypernet forward (hot path in Pallas), returns the split param tuple.

    h: (B, history_size), emb: (B, embedding_size)
    prepped_params: output of prepare_hypernet_params (layout prep done once).
    """
    # TODO(synk): the `h is None` / `emb is None` fallback branches of the PyTorch
    # module (pure bias broadcast) are not implemented; this covers the
    # use_history && use_embedding configuration.
    w_rnn_t, w_emb_t, bias, w1t = prepped_params
    B, hist = h.shape
    embd = emb.shape[1]
    hidden = w_rnn_t.shape[1]
    out_size = w1t.shape[1]

    # Activations follow the weight dtype (bf16 by default, f32 for exact mode);
    # accumulation, bias add and tanh are always f32 inside the kernel.
    act_dtype = w_rnn_t.dtype
    h = h.astype(act_dtype)
    emb = emb.astype(act_dtype)

    tb = _pick_batch_tile(B)
    grid = (pl.cdiv(B, tb),)

    isz = jnp.dtype(act_dtype).itemsize
    cost = pl.CostEstimate(
        flops=2 * B * ((hist + embd) * hidden + hidden * out_size),
        transcendentals=B * hidden,
        bytes_accessed=(
            isz * (B * (hist + embd)                       # h, emb
                   + (hist + embd) * hidden                # W_rnn^T, W_emb^T
                   + hidden * out_size)                    # W1^T
            + 4 * bias.size                                # merged bias (f32)
            + 4 * B * out_size                             # f32 output
        ),
    )

    out = pl.pallas_call(
        hypernet_kernel,
        out_shape=jax.ShapeDtypeStruct((B, out_size), jnp.float32),
        grid=grid,
        in_specs=[
            pl.BlockSpec((tb, hist), lambda i: (i, 0)),        # h tile
            pl.BlockSpec((tb, embd), lambda i: (i, 0)),        # emb tile
            pl.BlockSpec((hist, hidden), lambda i: (0, 0)),    # W_rnn^T (resident)
            pl.BlockSpec((embd, hidden), lambda i: (0, 0)),    # W_emb^T (resident)
            pl.BlockSpec(bias.shape, lambda i: (0, 0)),        # merged biases
            pl.BlockSpec((hidden, out_size), lambda i: (0, 0)),  # W1^T (resident)
        ],
        out_specs=pl.BlockSpec((tb, out_size), lambda i: (i, 0)),
        compiler_params=pltpu.CompilerParams(
            dimension_semantics=("parallel",)   # only matters when grid > 1 (v7x)
        ),
        cost_estimate=cost,
    )(h, emb, w_rnn_t, w_emb_t, bias, w1t)

    # Static host-side slicing (no device->host sync); the lane-dense (B, 128)
    # output stays intact in the kernel, splits are lazy XLA slices.
    ends = list(accumulate(param_sizes))
    starts = [0] + ends[:-1]
    return tuple(out[..., s:e] for s, e in zip(starts, ends))


def hypernet_reference(h, emb, params, param_sizes):
    """Pure-JAX f32 reference matching the PyTorch forward."""
    w_rnn, w_emb, first_bias, w1, b1 = params
    hidden = first_bias + h @ w_rnn.T + emb @ w_emb.T
    hidden = jnp.tanh(hidden) @ w1.T + b1
    ends = list(accumulate(param_sizes))
    starts = [0] + ends[:-1]
    return tuple(hidden[..., s:e] for s, e in zip(starts, ends))


if __name__ == "__main__":
    history_size = 32
    embedding_size = 32
    hidden_sizes = [64]
    param_sizes = (64, 64)
    output_size = sum(param_sizes)
    layer_sizes = list(hidden_sizes) + [output_size]
    B = 128  # batched invocations stacked into one call

    key = jax.random.PRNGKey(0)
    ks = jax.random.split(key, 7)

    # Deterministic parameter init (shapes from Hypernet.__init__, PyTorch (out,in)).
    first_bias = jax.random.uniform(
        ks[0], (layer_sizes[0],), minval=-0.1, maxval=0.1, dtype=jnp.float32
    )
    w_rnn = jax.random.normal(ks[1], (layer_sizes[0], history_size), jnp.float32) * 0.1
    w_emb = jax.random.normal(ks[2], (layer_sizes[0], embedding_size), jnp.float32) * 0.1
    w1 = jax.random.normal(ks[3], (layer_sizes[1], layer_sizes[0]), jnp.float32) * 0.1
    b1 = jax.random.uniform(
        ks[4], (layer_sizes[1],), minval=-0.1, maxval=0.1, dtype=jnp.float32
    )
    params = (w_rnn, w_emb, first_bias, w1, b1)

    # Inputs: h (*, history_size), emb (*, embedding_size)
    h = jax.random.normal(ks[5], (B, history_size), jnp.float32)
    emb = jax.random.normal(ks[6], (B, embedding_size), jnp.float32)

    ref = hypernet_reference(h, emb, params, param_sizes)

    # 1) Exact-precision path (f32 weights) — matches the PyTorch module numerics.
    prepped_f32 = jax.block_until_ready(prepare_hypernet_params(params, jnp.float32))
    out_f32 = jax.block_until_ready(hypernet_forward(h, emb, prepped_f32, param_sizes))
    for o, r in zip(out_f32, ref):
        assert o.shape == r.shape
        assert jnp.allclose(o, r, atol=1e-5, rtol=1e-5)

    # 2) Default perf path: bf16 weights/activations, f32 MXU accumulation,
    #    f32 bias add / tanh / output. Checked at bf16-appropriate tolerance.
    prepped_bf16 = jax.block_until_ready(prepare_hypernet_params(params))
    out_bf16 = jax.block_until_ready(hypernet_forward(h, emb, prepped_bf16, param_sizes))
    for o, r in zip(out_bf16, ref):
        assert o.shape == r.shape
        assert jnp.allclose(o, r, atol=3e-2, rtol=3e-2)

    print("KERNEL_OK")
</pallas_src>

<mosaic_0001>
module attributes {stable_mosaic.version = 11 : i64} {
  func.func @hypernet_kernel(%arg0: i32, %arg1: memref<128x32xf32, #tpu.memory_space<vmem>>, %arg2: memref<128x32xf32, #tpu.memory_space<vmem>>, %arg3: memref<32x64xf32, #tpu.memory_space<vmem>>, %arg4: memref<32x64xf32, #tpu.memory_space<vmem>>, %arg5: memref<2x128xf32, #tpu.memory_space<vmem>>, %arg6: memref<64x128xf32, #tpu.memory_space<vmem>>, %arg7: memref<128x128xf32, #tpu.memory_space<vmem>>) attributes {dimension_semantics = [#tpu.dimension_semantics<parallel>], iteration_bounds = array<i64: 1>, scalar_prefetch = 0 : i64, scratch_operands = 0 : i64, tpu.core_type = #tpu.core_type<tc>, window_params = [{transform_indices = @transform_0, window_bounds = array<i64: 128, 32>}, {transform_indices = @transform_1, window_bounds = array<i64: 128, 32>}, {pipeline_mode = #tpu.pipeline_mode<synchronous>, transform_indices = @transform_2, window_bounds = array<i64: 32, 64>}, {pipeline_mode = #tpu.pipeline_mode<synchronous>, transform_indices = @transform_3, window_bounds = array<i64: 32, 64>}, {pipeline_mode = #tpu.pipeline_mode<synchronous>, transform_indices = @transform_4, window_bounds = array<i64: 2, 128>}, {pipeline_mode = #tpu.pipeline_mode<synchronous>, transform_indices = @transform_5, window_bounds = array<i64: 64, 128>}, {transform_indices = @transform_6, window_bounds = array<i64: 128, 128>}]} {
    %c0 = arith.constant 0 : index
    %c0_0 = arith.constant 0 : index
    %0 = vector.load %arg5[%c0, %c0_0] : memref<2x128xf32, #tpu.memory_space<vmem>>, vector<1x64xf32>
    %c0_1 = arith.constant 0 : index
    %c0_2 = arith.constant 0 : index
    %1 = vector.load %arg1[%c0_1, %c0_2] : memref<128x32xf32, #tpu.memory_space<vmem>>, vector<128x32xf32>
    %c0_3 = arith.constant 0 : index
    %c0_4 = arith.constant 0 : index
    %2 = vector.load %arg3[%c0_3, %c0_4] : memref<32x64xf32, #tpu.memory_space<vmem>>, vector<32x64xf32>
    %cst = arith.constant dense<0.000000e+00> : vector<128x64xf32>
    %3 = tpu.matmul %1, %2, %cst {dimension_numbers = #tpu.dot_dimension_numbers<[1], [0], [0], [1], [0, 0, 1, 1], [], []>} : vector<128x32xf32>, vector<32x64xf32>, vector<128x64xf32> -> vector<128x64xf32>
    %4 = vector.broadcast %0 : vector<1x64xf32> to vector<128x64xf32>
    %5 = arith.addf %4, %3 : vector<128x64xf32>
    %c0_5 = arith.constant 0 : index
    %c0_6 = arith.constant 0 : index
    %6 = vector.load %arg2[%c0_5, %c0_6] : memref<128x32xf32, #tpu.memory_space<vmem>>, vector<128x32xf32>
    %c0_7 = arith.constant 0 : index
    %c0_8 = arith.constant 0 : index
    %7 = vector.load %arg4[%c0_7, %c0_8] : memref<32x64xf32, #tpu.memory_space<vmem>>, vector<32x64xf32>
    %cst_9 = arith.constant dense<0.000000e+00> : vector<128x64xf32>
    %8 = tpu.matmul %6, %7, %cst_9 {dimension_numbers = #tpu.dot_dimension_numbers<[1], [0], [0], [1], [0, 0, 1, 1], [], []>} : vector<128x32xf32>, vector<32x64xf32>, vector<128x64xf32> -> vector<128x64xf32>
    %9 = arith.addf %5, %8 : vector<128x64xf32>
    %10 = math.tanh %9 : vector<128x64xf32>
    %c0_10 = arith.constant 0 : index
    %c0_11 = arith.constant 0 : index
    %11 = vector.load %arg6[%c0_10, %c0_11] : memref<64x128xf32, #tpu.memory_space<vmem>>, vector<64x128xf32>
    %cst_12 = arith.constant dense<0.000000e+00> : vector<128x128xf32>
    %12 = tpu.matmul %10, %11, %cst_12 {dimension_numbers = #tpu.dot_dimension_numbers<[1], [0], [0], [1], [0, 0, 1, 1], [], []>} : vector<128x64xf32>, vector<64x128xf32>, vector<128x128xf32> -> vector<128x128xf32>
    %c1 = arith.constant 1 : index
    %c0_13 = arith.constant 0 : index
    %13 = vector.load %arg5[%c1, %c0_13] : memref<2x128xf32, #tpu.memory_space<vmem>>, vector<1x128xf32>
    %14 = vector.broadcast %13 : vector<1x128xf32> to vector<128x128xf32>
    %15 = arith.addf %12, %14 : vector<128x128xf32>
    %c0_14 = arith.constant 0 : index
    %c0_15 = arith.constant 0 : index
    %16 = vector.load %arg7[%c0_14, %c0_15] : memref<128x128xf32, #tpu.memory_space<vmem>>, vector<128x128xf32>
    tpu.vector_store %arg7[%c0_14, %c0_15], %15 {strides = array<i32>} : memref<128x128xf32, #tpu.memory_space<vmem>>, vector<128x128xf32>,
    return
  }
  func.func @transform_0(%arg0: i32) -> (i32, i32) {
    %c0_i32 = arith.constant 0 : i32
    %c0_i32_0 = arith.constant 0 : i32
    return %arg0, %c0_i32 : i32, i32
  }
  func.func @transform_1(%arg0: i32) -> (i32, i32) {
    %c0_i32 = arith.constant 0 : i32
    %c0_i32_0 = arith.constant 0 : i32
    return %arg0, %c0_i32 : i32, i32
  }
  func.func @transform_2(%arg0: i32) -> (i32, i32) {
    %c0_i32 = arith.constant 0 : i32
    %c0_i32_0 = arith.constant 0 : i32
    %c0_i32_1 = arith.constant 0 : i32
    return %c0_i32, %c0_i32_0 : i32, i32
  }
  func.func @transform_3(%arg0: i32) -> (i32, i32) {
    %c0_i32 = arith.constant 0 : i32
    %c0_i32_0 = arith.constant 0 : i32
    %c0_i32_1 = arith.constant 0 : i32
    return %c0_i32, %c0_i32_0 : i32, i32
  }
  func.func @transform_4(%arg0: i32) -> (i32, i32) {
    %c0_i32 = arith.constant 0 : i32
    %c0_i32_0 = arith.constant 0 : i32
    %c0_i32_1 = arith.constant 0 : i32
    return %c0_i32, %c0_i32_0 : i32, i32
  }
  func.func @transform_5(%arg0: i32) -> (i32, i32) {
    %c0_i32 = arith.constant 0 : i32
    %c0_i32_0 = arith.constant 0 : i32
    %c0_i32_1 = arith.constant 0 : i32
    return %c0_i32, %c0_i32_0 : i32, i32
  }
  func.func @transform_6(%arg0: i32) -> (i32, i32) {
    %c0_i32 = arith.constant 0 : i32
    %c0_i32_0 = arith.constant 0 : i32
    return %arg0, %c0_i32 : i32, i32
  }
}

</mosaic_0001>

<bundles_post_ra>
// kernel: hypernet_forward.1
= control target key start
LH: loop header
LB: loop body
LE: loop exit
PB: predicated region body
PF: predicated region fallthrough
CT: control target
= control target key end

     0   :  { %vm44_vm0 = vcmask 261120   ;;  %vm516_vm1 = vcmask 523264   ;;  %s1332_s2 = inlined_call_operand.vmem [shape: f32[32,64], index: 2, kind: input, shape index: {}]   ;;  %s1333_s0 = inlined_call_operand.vmem [shape: f32[128,32], index: 0, kind: input, shape index: {}]   ;;  %s1334_s3 = inlined_call_operand.vmem [shape: f32[32,64], index: 3, kind: input, shape index: {}]   ;;  %s1335_s1 = inlined_call_operand.vmem [shape: f32[128,32], index: 1, kind: input, shape index: {}]   ;;  %s1336_s5 = inlined_call_operand.vmem [shape: f32[64,128], index: 5, kind: input, shape index: {}]   ;;  %s1337_s4 = inlined_call_operand.vmem [shape: f32[2,128], index: 4, kind: input, shape index: {}]   ;;  %s1338_s6 = inlined_call_operand.vmem [shape: f32[128,128], index: 6, kind: output, shape index: {}]  }
   0x1   :  { %v40_v0 = vld [vmem:[%s1332_s2] sm:$0xff]  ;;  %v41_v1 = vld [vmem:[%s1332_s2 + $0x8] sm:$0xff]  ;;  %v42_v2 = vld [vmem:[%s1332_s2 + $0x10] sm:$0xff] }
   0x2   :  { %v948_v3 = vpack.c.bf16 %v41_v1, %v40_v0  ;;  %v43_v4 = vld [vmem:[%s1332_s2 + $0x18] sm:$0xff]  ;;  %v24_v5 = vld [vmem:[%s1333_s0] sm:$0xff]  ;;  %v275_v8 = vld [vmem:[%s1334_s3 + $0x8] sm:$0xff] }
   0x3   :  { %v952_v6 = vpack.c.bf16 %v43_v4, %v42_v2  ;;  %852 = vmatprep.mubr.msk.f32.mxu0 %vm44_vm0, %v24_v5  ;;  %v274_v7 = vld [vmem:[%s1334_s3] sm:$0xff]  ;;  %v276_v10 = vld [vmem:[%s1334_s3 + $0x10] sm:$0xff]  ;;  %v277_v11 = vld [vmem:[%s1334_s3 + $0x18] sm:$0xff] }
   0x4   :  { %949 = vmatprep.subr.bf16.mxu0 %v948_v3  ;;  %980 = vmatprep.subr.bf16.mxu1 %v948_v3  ;;  %v956_v9 = vpack.c.bf16 %v275_v8, %v274_v7  ;;  %v25_v12 = vld [vmem:[%s1333_s0 + $0x8] sm:$0xff]  ;;  %v32_v13 = vld [vmem:[%s1333_s0 + $0x40] sm:$0xff]  ;;  %v26_v15 = vld [vmem:[%s1333_s0 + $0x10] sm:$0xff]  ;;  %v960_v16 = vpack.c.bf16 %v277_v11, %v276_v10 }
   0x5   :  { %951 = vmatpush3.bf16.msra.mxu0 %v948_v3  ;;  %982 = vmatpush3.bf16.msra.mxu1 %v948_v3  ;;  %v33_v14 = vld [vmem:[%s1333_s0 + $0x48] sm:$0xff]  ;;  %v34_v17 = vld [vmem:[%s1333_s0 + $0x50] sm:$0xff]  ;;  %v27_v18 = vld [vmem:[%s1333_s0 + $0x18] sm:$0xff] }
   0x6   :  { %953 = vmatprep.subr.bf16.mxu0 %v952_v6  ;;  %981 = vmatprep.subr.bf16.mxu1 %v952_v6  ;;  %v35_v19 = vld [vmem:[%s1333_s0 + $0x58] sm:$0xff]  ;;  %v28_v20 = vld [vmem:[%s1333_s0 + $0x20] sm:$0xff]  ;;  %v29_v22 = vld [vmem:[%s1333_s0 + $0x28] sm:$0xff] }
   0x7   :  { %864 = vmatprep.mubr.msk.f32.mxu1 %vm44_vm0, %v32_v13  ;;  %v36_v21 = vld [vmem:[%s1333_s0 + $0x60] sm:$0xff]  ;;  %v37_v23 = vld [vmem:[%s1333_s0 + $0x68] sm:$0xff]  ;;  %v30_v24 = vld [vmem:[%s1333_s0 + $0x30] sm:$0xff] }
   0x8   :  { %v38_v25 = vld [vmem:[%s1333_s0 + $0x70] sm:$0xff]  ;;  %v31_v26 = vld [vmem:[%s1333_s0 + $0x38] sm:$0xff]  ;;  %v258_v28 = vld [vmem:[%s1335_s1] sm:$0xff] }
   0x9   :  { %955 = vmatpush3.bf16.msra.mxu0 %v952_v6  ;;  %983 = vmatpush3.bf16.msra.mxu1 %v952_v6  ;;  %v39_v27 = vld [vmem:[%s1333_s0 + $0x78] sm:$0xff]  ;;  %v259_v29 = vld [vmem:[%s1335_s1 + $0x8] sm:$0xff]  ;;  %v260_v30 = vld [vmem:[%s1335_s1 + $0x10] sm:$0xff] }
   0xa   :  { %957 = vmatprep.subr.bf16.mxu0 %v956_v9  ;;  %v261_v31 = vld [vmem:[%s1335_s1 + $0x18] sm:$0xff]  ;;  %v262_v32 = vld [vmem:[%s1335_s1 + $0x20] sm:$0xff]  ;;  %v263_v33 = vld [vmem:[%s1335_s1 + $0x28] sm:$0xff] }
   0xb   :  { %v264_v34 = vld [vmem:[%s1335_s1 + $0x30] sm:$0xff]  ;;  %v265_v35 = vld [vmem:[%s1335_s1 + $0x38] sm:$0xff]  ;;  %v266_v36 = vld [vmem:[%s1335_s1 + $0x40] sm:$0xff] }
   0xc   :  { %853 = vmatmul.mubr.msk.f32.vlgmr.msra.gmra.mrb[0].mxu0 %vm44_vm0, %v25_v12  ;;  %865 = vmatmul.mubr.msk.f32.vlgmr.msra.gmra.mrb[0].mxu1 %vm44_vm0, %v33_v14  ;;  %v267_v37 = vld [vmem:[%s1335_s1 + $0x48] sm:$0xff]  ;;  %v268_v38 = vld [vmem:[%s1335_s1 + $0x50] sm:$0xff]  ;;  %v269_v39 = vld [vmem:[%s1335_s1 + $0x58] sm:$0xff] }
   0xd   :  { %959 = vmatpush3.bf16.msra.mxu0 %v956_v9  ;;  %855 = vmatprep.mubr.msk.f32.mxu0 %vm44_vm0, %v26_v15  ;;  %v270_v40 = vld [vmem:[%s1335_s1 + $0x60] sm:$0xff]  ;;  %v271_v41 = vld [vmem:[%s1335_s1 + $0x68] sm:$0xff]  ;;  %v272_v42 = vld [vmem:[%s1335_s1 + $0x70] sm:$0xff] }
   0xe   :  { %961 = vmatprep.subr.bf16.mxu0 %v960_v16  ;;  %867 = vmatprep.mubr.msk.f32.mxu1 %vm44_vm0, %v34_v17  ;;  %v273_v43 = vld [vmem:[%s1335_s1 + $0x78] sm:$0xff]  ;;  %v503_v44 = vld [vmem:[%s1336_s5] sm:$0xff]  ;;  %v504_v45 = vld [vmem:[%s1336_s5 + $0x8] sm:$0xff] }
   0xf   :  { %v964_v46 = vpack.c.bf16 %v504_v45, %v503_v44  ;;  %v505_v47 = vld [vmem:[%s1336_s5 + $0x10] sm:$0xff]  ;;  %v506_v48 = vld [vmem:[%s1336_s5 + $0x18] sm:$0xff]  ;;  %v507_v50 = vld [vmem:[%s1336_s5 + $0x20] sm:$0xff] }
  0x10   :  { %856 = vmatmul.mubr.msk.f32.gmra.mrb[2].mxu0 %vm44_vm0, %v27_v18  ;;  %868 = vmatmul.mubr.msk.f32.gmra.mrb[2].mxu1 %vm44_vm0, %v35_v19  ;;  %v968_v49 = vpack.c.bf16 %v506_v48, %v505_v47  ;;  %v508_v51 = vld [vmem:[%s1336_s5 + $0x28] sm:$0xff]  ;;  %v509_v53 = vld [vmem:[%s1336_s5 + $0x30] sm:$0xff]  ;;  %v510_v54 = vld [vmem:[%s1336_s5 + $0x38] sm:$0xff] }
  0x11   :  { %858 = vmatprep.mubr.msk.f32.mxu0 %vm44_vm0, %v28_v20  ;;  %963 = vmatpush3.bf16.msra.mxu0 %v960_v16  ;;  %v972_v52 = vpack.c.bf16 %v508_v51, %v507_v50  ;;  %v976_v55 = vpack.c.bf16 %v510_v54, %v509_v53  ;;  %v746_v0 = vld [vmem:[%s1337_s4] ss:$0 sm:$0xff] }
  0x12   :  { %870 = vmatprep.mubr.msk.f32.mxu1 %vm44_vm0, %v36_v21  ;;  %965 = vmatprep.subr.bf16.mxu1 %v964_v46 }
  0x13   :  { %967 = vmatpush3.bf16.msra.mxu1 %v964_v46 }
  0x14   :  { %859 = vmatmul.mubr.msk.f32.gmra.mrb[4].mxu0 %vm44_vm0, %v29_v22  ;;  %871 = vmatmul.mubr.msk.f32.gmra.mrb[4].mxu1 %vm44_vm0, %v37_v23 }
  0x15   :  { %861 = vmatprep.mubr.msk.f32.mxu0 %vm44_vm0, %v30_v24  ;;  %873 = vmatprep.mubr.msk.f32.mxu1 %vm44_vm0, %v38_v25 }
  0x16   :  { %969 = vmatprep.subr.bf16.mxu1 %v968_v49 }
  0x17   :  { %971 = vmatpush3.bf16.msra.mxu1 %v968_v49 }
  0x18   :  { %862 = vmatmul.mubr.msk.f32.gmra.mrb[6].mxu0 %vm44_vm0, %v31_v26  ;;  %874 = vmatmul.mubr.msk.f32.gmra.mrb[6].mxu1 %vm44_vm0, %v39_v27 }
  0x19   :  { %884 = vmatprep.mubr.msk.f32.mxu0 %vm44_vm0, %v258_v28  ;;  %973 = vmatprep.subr.bf16.mxu1 %v972_v52 }
  0x1b   :  { %975 = vmatpush3.bf16.msra.mxu1 %v972_v52 }
  0x1c   :  { %885 = vmatmul.mubr.msk.f32.vlgmr.msra.gmra.mrb[0].mxu0 %vm44_vm0, %v259_v29  ;;  %977 = vmatprep.subr.bf16.mxu1 %v976_v55 }
  0x1d   :  { %887 = vmatprep.mubr.msk.f32.mxu0 %vm44_vm0, %v260_v30 }
  0x1f   :  { %979 = vmatpush3.bf16.msra.mxu1 %v976_v55 }
  0x20   :  { %888 = vmatmul.mubr.msk.f32.gmra.mrb[2].mxu0 %vm44_vm0, %v261_v31 }
  0x21   :  { %890 = vmatprep.mubr.msk.f32.mxu0 %vm44_vm0, %v262_v32 }
  0x24   :  { %891 = vmatmul.mubr.msk.f32.gmra.mrb[4].mxu0 %vm44_vm0, %v263_v33 }
  0x25   :  { %893 = vmatprep.mubr.msk.f32.mxu0 %vm44_vm0, %v264_v34 }
  0x28   :  { %894 = vmatmul.mubr.msk.f32.gmra.mrb[6].mxu0 %vm44_vm0, %v265_v35 }
  0x29   :  { %896 = vmatprep.mubr.msk.f32.mxu0 %vm44_vm0, %v266_v36 }
  0x2c   :  { %897 = vmatmul.mubr.msk.f32.gmra.mrb[8].mxu0 %vm44_vm0, %v267_v37 }
  0x2d   :  { %899 = vmatprep.mubr.msk.f32.mxu0 %vm44_vm0, %v268_v38 }
  0x30   :  { %900 = vmatmul.mubr.msk.f32.gmra.mrb[10].mxu0 %vm44_vm0, %v269_v39 }
  0x31   :  { %902 = vmatprep.mubr.msk.f32.mxu0 %vm44_vm0, %v270_v40 }
  0x34   :  { %903 = vmatmul.mubr.msk.f32.gmra.mrb[12].mxu0 %vm44_vm0, %v271_v41 }
  0x35   :  { %905 = vmatprep.mubr.msk.f32.mxu0 %vm44_vm0, %v272_v42 }
  0x38   :  { %906 = vmatmul.mubr.msk.f32.gmra.mrb[14].mxu0 %vm44_vm0, %v273_v43 }
  0xdf   :  { %v866_v56 = vpop.f32.mrb[0].mxu1 }
  0xe0   :  { %v199_v57 = vpop.f32.mrb[1].mxu1  ;;  %v251_v16 = vadd.f32 %v866_v56, %v746_v0 }
  0xe1   :  { %v250_v19 = vadd.f32 %v746_v0, %v199_v57  ;;  %v763_v57 = vld [vmem:[%s1337_s4 + $0x1] ss:$0 sm:$0xff] }
  0xe3   :  { %v869_v58 = vpop.f32.mrb[2].mxu1 }
  0xe4   :  { %v209_v59 = vpop.f32.mrb[3].mxu1  ;;  %v253_v24 = vadd.f32 %v869_v58, %v746_v0 }
  0xe5   :  { %v252_v27 = vadd.f32 %v746_v0, %v209_v59 }
  0xe7   :  { %v872_v60 = vpop.f32.mrb[4].mxu1 }
  0xe8   :  { %v219_v61 = vpop.f32.mrb[5].mxu1  ;;  %v255_v32 = vadd.f32 %v872_v60, %v746_v0 }
  0xe9   :  { %v254_v35 = vadd.f32 %v746_v0, %v219_v61 }
  0xeb   :  { %v875_v62 = vpop.f32.mrb[6].mxu1 }
  0xec   :  { %v1259_v63 = vpop.f32.mrb[7].mxu1  ;;  %v257_v40 = vadd.f32 %v875_v62, %v746_v0 }
  0xed   :  { %v256_v43 = vadd.f32 %v746_v0, %v1259_v63 }
  0xef   :  { %v886_v1 = vpop.f32.mrb[0].mxu0 }
  0xf0   :  { %v984_v2 = vadd.f32 %v886_v1, %v746_v0  ;;  %v392_v3 = vpop.f32.mrb[1].mxu0 }
  0xf1   :  { %v985_v4 = vadd.f32 %v746_v0, %v392_v3 }
  0xf3   :  { %1016 = vtanh.f32 %v985_v4  ;;  %v889_v5 = vpop.f32.mrb[2].mxu0 }
  0xf4   :  { %1018 = vtanh.f32 %v984_v2  ;;  %v986_v6 = vadd.f32 %v889_v5, %v746_v0  ;;  %v402_v7 = vpop.f32.mrb[3].mxu0 }
  0xf5   :  { %v987_v8 = vadd.f32 %v746_v0, %v402_v7 }
  0xf7   :  { %1020 = vtanh.f32 %v987_v8  ;;  %v892_v9 = vpop.f32.mrb[4].mxu0 }
  0xf8   :  { %1022 = vtanh.f32 %v986_v6  ;;  %v988_v10 = vadd.f32 %v892_v9, %v746_v0  ;;  %v412_v11 = vpop.f32.mrb[5].mxu0 }
  0xf9   :  { %v989_v12 = vadd.f32 %v746_v0, %v412_v11 }
  0xfb   :  { %1024 = vtanh.f32 %v989_v12  ;;  %v895_v13 = vpop.f32.mrb[6].mxu0 }
  0xfc   :  { %1026 = vtanh.f32 %v988_v10  ;;  %v990_v14 = vadd.f32 %v895_v13, %v746_v0  ;;  %v422_v15 = vpop.f32.mrb[7].mxu0 }
  0xfd   :  { %v1017_v17 = vpop.eup %1016  ;;  %v991_v18 = vadd.f32 %v746_v0, %v422_v15 }
  0xfe   :  { %v1019_v20 = vpop.eup %1018  ;;  %924 = vmatprep.mubr.msk.f32.mxu1 %vm516_vm1, %v1017_v17 }
  0xff   :  { %1028 = vtanh.f32 %v991_v18  ;;  %v898_v21 = vpop.f32.mrb[8].mxu0  ;;  %925 = vmatmul.mubr.msk.f32.vlgmr.msra.gmra.mrb[8].mxu1 %vm516_vm1, %v1019_v20 }
 0x100   :  { %1030 = vtanh.f32 %v990_v14  ;;  %v480_v22 = vadd.f32 %v898_v21, %v251_v16  ;;  %v432_v23 = vpop.f32.mrb[9].mxu0 }
 0x101   :  { %v1021_v25 = vpop.eup %1020  ;;  %v479_v26 = vadd.f32 %v432_v23, %v250_v19 }
 0x102   :  { %v1023_v28 = vpop.eup %1022  ;;  %927 = vmatprep.mubr.msk.f32.mxu1 %vm516_vm1, %v1021_v25 }
 0x103   :  { %1032 = vtanh.f32 %v479_v26  ;;  %v901_v29 = vpop.f32.mrb[10].mxu0  ;;  %928 = vmatmul.mubr.msk.f32.gmra.mrb[10].mxu1 %vm516_vm1, %v1023_v28 }
 0x104   :  { %1034 = vtanh.f32 %v480_v22  ;;  %v482_v30 = vadd.f32 %v901_v29, %v253_v24  ;;  %v442_v31 = vpop.f32.mrb[11].mxu0 }
 0x105   :  { %v1025_v33 = vpop.eup %1024  ;;  %v481_v34 = vadd.f32 %v442_v31, %v252_v27 }
 0x106   :  { %v1027_v36 = vpop.eup %1026  ;;  %930 = vmatprep.mubr.msk.f32.mxu1 %vm516_vm1, %v1025_v33 }
 0x107   :  { %1036 = vtanh.f32 %v481_v34  ;;  %v904_v37 = vpop.f32.mrb[12].mxu0  ;;  %931 = vmatmul.mubr.msk.f32.gmra.mrb[12].mxu1 %vm516_vm1, %v1027_v36 }
 0x108   :  { %1038 = vtanh.f32 %v482_v30  ;;  %v484_v38 = vadd.f32 %v904_v37, %v255_v32  ;;  %v452_v39 = vpop.f32.mrb[13].mxu0 }
 0x109   :  { %v1029_v41 = vpop.eup %1028  ;;  %v483_v42 = vadd.f32 %v452_v39, %v254_v35 }
 0x10a   :  { %v1031_v44 = vpop.eup %1030  ;;  %933 = vmatprep.mubr.msk.f32.mxu1 %vm516_vm1, %v1029_v41 }
 0x10b   :  { %1040 = vtanh.f32 %v483_v42  ;;  %v907_v45 = vpop.f32.mrb[14].mxu0  ;;  %934 = vmatmul.mubr.msk.f32.gmra.mrb[14].mxu1 %vm516_vm1, %v1031_v44 }
 0x10c   :  { %1042 = vtanh.f32 %v484_v38  ;;  %v486_v46 = vadd.f32 %v907_v45, %v257_v40  ;;  %v462_v47 = vpop.f32.mrb[15].mxu0 }
 0x10d   :  { %v1033_v48 = vpop.eup %1032  ;;  %v485_v49 = vadd.f32 %v462_v47, %v256_v43 }
 0x10e   :  { %v1035_v50 = vpop.eup %1034  ;;  %936 = vmatprep.mubr.msk.f32.mxu1 %vm516_vm1, %v1033_v48 }
 0x10f   :  { %1044 = vtanh.f32 %v485_v49  ;;  %937 = vmatmul.mubr.msk.f32.gmra.mrb[16].mxu1 %vm516_vm1, %v1035_v50 }
 0x110   :  { %1046 = vtanh.f32 %v486_v46 }
 0x111   :  { %v1037_v51 = vpop.eup %1036 }
 0x112   :  { %v1039_v52 = vpop.eup %1038  ;;  %939 = vmatprep.mubr.msk.f32.mxu1 %vm516_vm1, %v1037_v51 }
 0x113   :  { %940 = vmatmul.mubr.msk.f32.gmra.mrb[18].mxu1 %vm516_vm1, %v1039_v52 }
 0x115   :  { %v1041_v53 = vpop.eup %1040 }
 0x116   :  { %v1043_v54 = vpop.eup %1042  ;;  %942 = vmatprep.mubr.msk.f32.mxu1 %vm516_vm1, %v1041_v53 }
 0x117   :  { %943 = vmatmul.mubr.msk.f32.gmra.mrb[20].mxu1 %vm516_vm1, %v1043_v54 }
 0x119   :  { %v1045_v55 = vpop.eup %1044 }
 0x11a   :  { %v1047_v56 = vpop.eup %1046  ;;  %945 = vmatprep.mubr.msk.f32.mxu1 %vm516_vm1, %v1045_v55 }
 0x11b   :  { %946 = vmatmul.mubr.msk.f32.gmra.mrb[22].mxu1 %vm516_vm1, %v1047_v56 }
 0x1d2   :  { %v926_v58 = vpop.f32.mrb[8].mxu1 }
 0x1d3   :  { %v637_v59 = vadd.f32 %v926_v58, %v763_v57  ;;  %v631_v60 = vpop.f32.mrb[9].mxu1 }
 0x1d4   :  { %v632_v61 = vadd.f32 %v763_v57, %v631_v60 }
 0x1d5   :  { %711 = vst [vmem:[%s1338_s6 + $0x8] sm:$0xff] %v637_v59 }
 0x1d6   :  { %710 = vst [vmem:[%s1338_s6] sm:$0xff] %v632_v61  ;;  %v929_v62 = vpop.f32.mrb[10].mxu1 }
 0x1d7   :  { %v647_v63 = vadd.f32 %v929_v62, %v763_v57  ;;  %v641_v0 = vpop.f32.mrb[11].mxu1 }
 0x1d8   :  { %v642_v1 = vadd.f32 %v763_v57, %v641_v0 }
 0x1d9   :  { %713 = vst [vmem:[%s1338_s6 + $0x18] sm:$0xff] %v647_v63 }
 0x1da   :  { %712 = vst [vmem:[%s1338_s6 + $0x10] sm:$0xff] %v642_v1  ;;  %v932_v2 = vpop.f32.mrb[12].mxu1 }
 0x1db   :  { %v657_v3 = vadd.f32 %v932_v2, %v763_v57  ;;  %v651_v4 = vpop.f32.mrb[13].mxu1 }
 0x1dc   :  { %v652_v5 = vadd.f32 %v763_v57, %v651_v4 }
 0x1dd   :  { %715 = vst [vmem:[%s1338_s6 + $0x28] sm:$0xff] %v657_v3 }
 0x1de   :  { %714 = vst [vmem:[%s1338_s6 + $0x20] sm:$0xff] %v652_v5  ;;  %v935_v6 = vpop.f32.mrb[14].mxu1 }
 0x1df   :  { %v667_v7 = vadd.f32 %v935_v6, %v763_v57  ;;  %v661_v8 = vpop.f32.mrb[15].mxu1 }
 0x1e0   :  { %v662_v9 = vadd.f32 %v763_v57, %v661_v8 }
 0x1e1   :  { %717 = vst [vmem:[%s1338_s6 + $0x38] sm:$0xff] %v667_v7 }
 0x1e2   :  { %716 = vst [vmem:[%s1338_s6 + $0x30] sm:$0xff] %v662_v9  ;;  %v938_v10 = vpop.f32.mrb[16].mxu1 }
 0x1e3   :  { %v677_v11 = vadd.f32 %v938_v10, %v763_v57  ;;  %v671_v12 = vpop.f32.mrb[17].mxu1 }
 0x1e4   :  { %v672_v13 = vadd.f32 %v763_v57, %v671_v12 }
 0x1e5   :  { %719 = vst [vmem:[%s1338_s6 + $0x48] sm:$0xff] %v677_v11 }
 0x1e6   :  { %718 = vst [vmem:[%s1338_s6 + $0x40] sm:$0xff] %v672_v13  ;;  %v941_v14 = vpop.f32.mrb[18].mxu1 }
 0x1e7   :  { %v687_v15 = vadd.f32 %v941_v14, %v763_v57  ;;  %v681_v16 = vpop.f32.mrb[19].mxu1 }
 0x1e8   :  { %v682_v17 = vadd.f32 %v763_v57, %v681_v16 }
 0x1e9   :  { %721 = vst [vmem:[%s1338_s6 + $0x58] sm:$0xff] %v687_v15 }
 0x1ea   :  { %720 = vst [vmem:[%s1338_s6 + $0x50] sm:$0xff] %v682_v17  ;;  %v944_v18 = vpop.f32.mrb[20].mxu1 }
 0x1eb   :  { %v697_v19 = vadd.f32 %v944_v18, %v763_v57  ;;  %v691_v20 = vpop.f32.mrb[21].mxu1 }
 0x1ec   :  { %v692_v21 = vadd.f32 %v763_v57, %v691_v20 }
 0x1ed   :  { %723 = vst [vmem:[%s1338_s6 + $0x68] sm:$0xff] %v697_v19 }
 0x1ee   :  { %722 = vst [vmem:[%s1338_s6 + $0x60] sm:$0xff] %v692_v21  ;;  %v947_v22 = vpop.f32.mrb[22].mxu1 }
 0x1ef   :  { %v707_v23 = vadd.f32 %v947_v22, %v763_v57  ;;  %v701_v24 = vpop.f32.mrb[23].mxu1 }
 0x1f0   :  { %v702_v25 = vadd.f32 %v763_v57, %v701_v24 }
 0x1f1   :  { %725 = vst [vmem:[%s1338_s6 + $0x78] sm:$0xff] %v707_v23 }
 0x1f2   :  { %724 = vst [vmem:[%s1338_s6 + $0x70] sm:$0xff] %v702_v25 }

</bundles_post_ra>
